<compile_context>
chip_gen: v6e
topology: v6e:2x2x1
jax: 0.10.0
libtpu: 0.0.40
codegen_flags: <defaults>
</compile_context>

<pallas_src>
import jax
import jax.numpy as jnp
from jax import lax
from jax.experimental import pallas as pl
from jax.experimental.pallas import tpu as pltpu

EPS = 1e-5          # BatchNorm2d default eps
LANE = 128          # TPU lane width
VMEM_LIMIT = 32 * 1024 * 1024      # explicit scoped-VMEM budget (safe on v5e/v6e/v7x)
TILE_BUDGET = 6 * 1024 * 1024      # per-step double-buffered working-set target


def _round_up(x, m):
    return (x + m - 1) // m * m


def _interp_matrix(in_size: int, out_size: int) -> jnp.ndarray:
    """Bilinear interpolation matrix [out_size, in_size] (align_corners=True)."""
    if in_size == 1:
        return jnp.ones((out_size, 1), jnp.float32)
    src = jnp.arange(out_size, dtype=jnp.float32) * (in_size - 1) / (out_size - 1)
    lo = jnp.clip(jnp.floor(src), 0, in_size - 2).astype(jnp.int32)
    frac = src - lo.astype(jnp.float32)
    hi = lo + 1
    return (jax.nn.one_hot(lo, in_size, dtype=jnp.float32) * (1.0 - frac)[:, None]
            + jax.nn.one_hot(hi, in_size, dtype=jnp.float32) * frac[:, None])


# ----------------------------- Pallas kernels -----------------------------

def _matmul_kernel(a_ref, b_ref, o_ref):
    # Plain M-tiled matmul (used for the batched bilinear-upsample interps).
    o_ref[...] = jnp.dot(a_ref[...], b_ref[...], preferred_element_type=jnp.float32)


def _make_conv_stats_kernel(tile_h, width, cin, cout_p):
    """Pass A: 3x3 conv of one (batch, H-tile) halo slab + per-tile BN partials.

    x_ref : (1, 1, tile_h+2, width+2, cin)   bf16 halo slab
    w_ref : (3, 3, cin, cout_p)              bf16 weights (resident)
    y_ref : (1, tile_h, width, cout_p)       f32 pre-BN conv output
    s_ref : (1, 1, 2, cout_p)                f32 per-tile (sum, sum_sq)
    """
    def kernel(x_ref, w_ref, y_ref, s_ref):
        x = x_ref[0, 0]                                        # [th+2, W+2, Cin]
        acc = jnp.zeros((tile_h * width, cout_p), jnp.float32)
        # in-kernel im2col: 9 shifted matmuls accumulated in f32 (MXU, bf16 in).
        for dy in range(3):
            for dx in range(3):
                patch = x[dy:dy + tile_h, dx:dx + width, :].reshape(
                    tile_h * width, cin)
                acc = acc + jnp.dot(patch, w_ref[dy, dx],
                                    preferred_element_type=jnp.float32)
        # NOTE: conv bias intentionally omitted — it cancels exactly under
        # training-mode BatchNorm (x + b - mean(x + b) == x - mean(x)).
        y_ref[0] = acc.reshape(tile_h, width, cout_p)
        ssum = jnp.sum(acc, axis=0, keepdims=True)             # [1, Cout_p]
        ssq = jnp.sum(acc * acc, axis=0, keepdims=True)        # [1, Cout_p]
        s_ref[0, 0] = jnp.concatenate([ssum, ssq], axis=0)     # [2, Cout_p]
    return kernel


def _bn_relu_kernel(y_ref, sc_ref, sh_ref, o_ref):
    # Pass B: apply globally-reduced BN (scale/shift) + ReLU, lane-dense store.
    z = y_ref[...] * sc_ref[...] + sh_ref[...]
    o_ref[...] = jnp.maximum(z, 0.0).astype(o_ref.dtype)


# ----------------------------- wrappers -----------------------------------

def _pallas_matmul(a, b, tile_m=512):
    """M-tiled f32 matmul; K and N blocks stay resident."""
    m, k = a.shape
    _, n = b.shape
    tm = m if m <= tile_m else tile_m
    return pl.pallas_call(
        _matmul_kernel,
        out_shape=jax.ShapeDtypeStruct((m, n), jnp.float32),
        grid=(pl.cdiv(m, tm),),
        in_specs=[pl.BlockSpec((tm, k), lambda i: (i, 0)),
                  pl.BlockSpec((k, n), lambda i: (0, 0))],
        out_specs=pl.BlockSpec((tm, n), lambda i: (i, 0)),
        compiler_params=pltpu.CompilerParams(
            dimension_semantics=("parallel",),
            vmem_limit_bytes=VMEM_LIMIT),
    )(a.astype(jnp.float32), b.astype(jnp.float32))


def upsample_bilinear_2x_nhwc(x_nhwc):
    """nn.UpsamplingBilinear2d(scale_factor=2) on an NHWC tensor.

    Separable interp as two batched whole-tensor matmuls instead of one tiny
    matmul per (n, c) plane; reshape/transpose glue is cheap XLA.
    """
    n, hi, wi, c = x_nhwc.shape
    ho, wo = 2 * hi, 2 * wi
    ah = _interp_matrix(hi, ho)                                  # [Ho, Hi]
    awt = _interp_matrix(wi, wo).T                               # [Wi, Wo]
    # H-interp for all batches/cols at once: [Ho,Hi] @ [Hi, N*Wi*C]
    xh = jnp.transpose(x_nhwc, (1, 0, 2, 3)).reshape(hi, n * wi * c)
    t = _pallas_matmul(ah, xh)                                   # [Ho, N*Wi*C]
    # W-interp: [N*Ho*C, Wi] @ [Wi, Wo]
    t = t.reshape(ho, n, wi, c).transpose(1, 0, 3, 2).reshape(n * ho * c, wi)
    o = _pallas_matmul(t, awt)                                   # [N*Ho*C, Wo]
    return o.reshape(n, ho, c, wo).transpose(0, 1, 3, 2)         # [N, Ho, Wo, C]


def _pick_tile_h(h, width, cin, cout_p, budget=TILE_BUDGET):
    """Largest divisor of H whose double-buffered per-step working set fits the
    budget (sized conservatively for v7x's 64 MiB VMEM)."""
    for t in range(h, 0, -1):
        if h % t:
            continue
        slab = (t + 2) * (width + 2) * cin * 2        # bf16 halo slab
        ytile = t * width * cout_p * 4                # f32 pre-BN tile
        if 2 * (slab + ytile) <= budget:
            return t
    return 1


def _halo_tiles(x_nhwc, tile_h):
    """[N,H,W,C] -> zero-pad spatially by 1 -> halo row-tiles
    [N, H/tile_h, tile_h+2, W+2, C] (cheap XLA gather; ~1.1-1.25x read traffic
    vs. 9x for a host-side im2col)."""
    n, h, w, c = x_nhwc.shape
    xp = jnp.pad(x_nhwc, ((0, 0), (1, 1), (1, 1), (0, 0)))
    ht = h // tile_h
    rows = jnp.arange(ht)[:, None] * tile_h + jnp.arange(tile_h + 2)[None, :]
    return xp[:, rows]                                # [N, HT, tile_h+2, W+2, C]


def conv_bn_relu_block(x_nhwc, w_hwio, gamma, beta, *, out_dtype=jnp.float32):
    """Conv3x3(pad=1) -> BatchNorm(batch stats) -> ReLU, NHWC, lane-padded Cout."""
    n, h, width, cin_x = x_nhwc.shape
    _, _, cin_w, cout = w_hwio.shape
    cout_p = _round_up(cout, LANE)

    # Pad weights: input channels up to the activation's channel count (it may
    # carry zero lane-padding from the previous block), output channels to LANE.
    w_p = jnp.zeros((3, 3, cin_x, cout_p), jnp.float32)
    w_p = w_p.at[:, :, :cin_w, :cout].set(w_hwio)
    g_p = jnp.zeros((cout_p,), jnp.float32).at[:cout].set(gamma)
    b_p = jnp.zeros((cout_p,), jnp.float32).at[:cout].set(beta)

    tile_h = _pick_tile_h(h, width, cin_x, cout_p)
    ht = h // tile_h

    xt = _halo_tiles(x_nhwc, tile_h).astype(jnp.bfloat16)   # bf16 MXU/DMA inputs
    w_bf = w_p.astype(jnp.bfloat16)

    # ---- pass A: conv + per-tile BN partial statistics (fully parallel grid) --
    kern = _make_conv_stats_kernel(tile_h, width, cin_x, cout_p)
    y, stats = pl.pallas_call(
        kern,
        out_shape=(jax.ShapeDtypeStruct((n, h, width, cout_p), jnp.float32),
                   jax.ShapeDtypeStruct((n, ht, 2, cout_p), jnp.float32)),
        grid=(n, ht),
        in_specs=[
            pl.BlockSpec((1, 1, tile_h + 2, width + 2, cin_x),
                         lambda i, j: (i, j, 0, 0, 0)),
            pl.BlockSpec((3, 3, cin_x, cout_p), lambda i, j: (0, 0, 0, 0)),
        ],
        out_specs=(
            pl.BlockSpec((1, tile_h, width, cout_p), lambda i, j: (i, j, 0, 0)),
            pl.BlockSpec((1, 1, 2, cout_p), lambda i, j: (i, j, 0, 0)),
        ),
        compiler_params=pltpu.CompilerParams(
            dimension_semantics=("parallel", "parallel"),
            vmem_limit_bytes=VMEM_LIMIT),
    )(xt, w_bf)

    # ---- global BN statistics (tiny XLA reduce over the per-tile partials) ---
    tot = stats.sum(axis=(0, 1))                       # [2, Cout_p]
    m = jnp.float32(n * h * width)
    mean = tot[0] / m
    var = jnp.maximum(tot[1] / m - mean * mean, 0.0)   # biased var (training BN)
    scale = g_p * lax.rsqrt(var + EPS)
    shift = b_p - mean * scale

    # ---- pass B: apply BN + ReLU (lane-dense Cout_p stores) ------------------
    out = pl.pallas_call(
        _bn_relu_kernel,
        out_shape=jax.ShapeDtypeStruct((n, h, width, cout_p), out_dtype),
        grid=(n, ht),
        in_specs=[
            pl.BlockSpec((1, tile_h, width, cout_p), lambda i, j: (i, j, 0, 0)),
            pl.BlockSpec((1, cout_p), lambda i, j: (0, 0)),
            pl.BlockSpec((1, cout_p), lambda i, j: (0, 0)),
        ],
        out_specs=pl.BlockSpec((1, tile_h, width, cout_p),
                               lambda i, j: (i, j, 0, 0)),
        compiler_params=pltpu.CompilerParams(
            dimension_semantics=("parallel", "parallel"),
            vmem_limit_bytes=VMEM_LIMIT),
    )(y, scale.reshape(1, cout_p), shift.reshape(1, cout_p))
    return out                                         # [N, H, W, Cout_p]


def init_deconv2d_params(key, in_channels, out_channels):
    """Deterministic synthetic init (conv: uniform fan-in scale, BN: gamma=1, beta=0)."""
    k1, k2, k3, k4 = jax.random.split(key, 4)
    s1 = 1.0 / jnp.sqrt(jnp.float32(in_channels * 9))
    s2 = 1.0 / jnp.sqrt(jnp.float32(out_channels * 9))
    return {
        "w1": jax.random.uniform(k1, (3, 3, in_channels, out_channels), jnp.float32, -s1, s1),
        "b1": jax.random.uniform(k2, (out_channels,), jnp.float32, -s1, s1),
        "g1": jnp.ones((out_channels,), jnp.float32),
        "beta1": jnp.zeros((out_channels,), jnp.float32),
        "w2": jax.random.uniform(k3, (3, 3, out_channels, out_channels), jnp.float32, -s2, s2),
        "b2": jax.random.uniform(k4, (out_channels,), jnp.float32, -s2, s2),
        "g2": jnp.ones((out_channels,), jnp.float32),
        "beta2": jnp.zeros((out_channels,), jnp.float32),
    }


def deconv2d_forward(params, fmap1, fmap2):
    """Matches Deconv2d.forward: fmap1 (skip) and fmap2 (to upsample) are NCHW f32.

    Conv biases b1/b2 are carried in params but not added in the kernel path:
    a per-channel bias cancels exactly in training-mode BatchNorm.
    """
    # NCHW -> NHWC once; all heavy work stays channels-last (lanes = channels).
    f1 = jnp.transpose(fmap1, (0, 2, 3, 1)).astype(jnp.float32)
    f2 = jnp.transpose(fmap2, (0, 2, 3, 1)).astype(jnp.float32)

    f2_up = upsample_bilinear_2x_nhwc(f2)
    offset = f2_up.shape[1] - f1.shape[1]
    p = offset // 2
    f1 = jnp.pad(f1, ((0, 0), (p, p), (p, p), (0, 0)))          # F.pad(fmap1, 2*[p, p])
    x = jnp.concatenate([f1, f2_up], axis=-1)                   # channel concat (lane dim)

    x = conv_bn_relu_block(x, params["w1"], params["g1"], params["beta1"],
                           out_dtype=jnp.bfloat16)              # lane-padded intermediate
    x = conv_bn_relu_block(x, params["w2"], params["g2"], params["beta2"],
                           out_dtype=jnp.float32)

    cout = params["w2"].shape[-1]
    x = x[..., :cout]                                           # drop lane padding
    return jnp.transpose(x, (0, 3, 1, 2))                       # back to NCHW


# ----------------------------- pure-JAX reference --------------------------

def _reference(params, fmap1, fmap2):
    n, c, hi, wi = fmap2.shape
    ah = _interp_matrix(hi, 2 * hi)
    aw = _interp_matrix(wi, 2 * wi)
    up = jnp.einsum('oh,nchw,pw->ncop', ah, fmap2, aw)
    p = (up.shape[2] - fmap1.shape[2]) // 2
    f1 = jnp.pad(fmap1, ((0, 0), (0, 0), (p, p), (p, p)))
    x = jnp.transpose(jnp.concatenate([f1, up], axis=1), (0, 2, 3, 1))

    def block(x, w, b, g, beta):
        y = lax.conv_general_dilated(x, w, (1, 1), 'SAME',
                                     dimension_numbers=('NHWC', 'HWIO', 'NHWC')) + b
        mean = jnp.mean(y, axis=(0, 1, 2), keepdims=True)
        var = jnp.mean((y - mean) ** 2, axis=(0, 1, 2), keepdims=True)
        return jnp.maximum((y - mean) * lax.rsqrt(var + EPS) * g + beta, 0.0)

    x = block(x, params["w1"], params["b1"], params["g1"], params["beta1"])
    x = block(x, params["w2"], params["b2"], params["g2"], params["beta2"])
    return jnp.transpose(x, (0, 3, 1, 2))


if __name__ == "__main__":
    key = jax.random.PRNGKey(0)
    k_f1, k_f2, k_p = jax.random.split(key, 3)

    c1, c2, out_channels = 4, 4, 4
    in_channels = c1 + c2                       # conv_block sees the concat channels
    fmap1 = jax.random.normal(k_f1, (2, c1, 16, 16), jnp.float32)   # skip connection
    fmap2 = jax.random.normal(k_f2, (2, c2, 8, 8), jnp.float32)     # upsampled 2x
    params = init_deconv2d_params(k_p, in_channels, out_channels)

    out = jax.block_until_ready(deconv2d_forward(params, fmap1, fmap2))
    ref = jax.block_until_ready(_reference(params, fmap1, fmap2))

    assert out.shape == (2, out_channels, 16, 16), out.shape
    max_err = float(jnp.max(jnp.abs(out - ref)))
    # Kernel matmuls take bf16 MXU inputs (f32 accumulation); reference is pure f32.
    assert max_err < 5e-2, f"mismatch vs reference, max abs err = {max_err}"
    print("KERNEL_OK")
</pallas_src>

<mosaic_0001>
module attributes {stable_mosaic.version = 11 : i64} {
  func.func @_matmul_kernel(%arg0: i32, %arg1: memref<16x8xf32, #tpu.memory_space<vmem>>, %arg2: memref<8x64xf32, #tpu.memory_space<vmem>>, %arg3: memref<16x64xf32, #tpu.memory_space<vmem>>) attributes {dimension_semantics = [#tpu.dimension_semantics<parallel>], iteration_bounds = array<i64: 1>, scalar_prefetch = 0 : i64, scratch_operands = 0 : i64, tpu.core_type = #tpu.core_type<tc>, window_params = [{transform_indices = @transform_0, window_bounds = array<i64: 16, 8>}, {pipeline_mode = #tpu.pipeline_mode<synchronous>, transform_indices = @transform_1, window_bounds = array<i64: 8, 64>}, {transform_indices = @transform_2, window_bounds = array<i64: 16, 64>}]} {
    %c0 = arith.constant 0 : index
    %c0_0 = arith.constant 0 : index
    %0 = vector.load %arg1[%c0, %c0_0] : memref<16x8xf32, #tpu.memory_space<vmem>>, vector<16x8xf32>
    %c0_1 = arith.constant 0 : index
    %c0_2 = arith.constant 0 : index
    %1 = vector.load %arg2[%c0_1, %c0_2] : memref<8x64xf32, #tpu.memory_space<vmem>>, vector<8x64xf32>
    %cst = arith.constant dense<0.000000e+00> : vector<16x64xf32>
    %2 = tpu.matmul %0, %1, %cst {dimension_numbers = #tpu.dot_dimension_numbers<[1], [0], [0], [1], [0, 0, 1, 1], [], []>} : vector<16x8xf32>, vector<8x64xf32>, vector<16x64xf32> -> vector<16x64xf32>
    %c0_3 = arith.constant 0 : index
    %c0_4 = arith.constant 0 : index
    %3 = vector.load %arg3[%c0_3, %c0_4] : memref<16x64xf32, #tpu.memory_space<vmem>>, vector<16x64xf32>
    tpu.vector_store %arg3[%c0_3, %c0_4], %2 {strides = array<i32>} : memref<16x64xf32, #tpu.memory_space<vmem>>, vector<16x64xf32>,
    return
  }
  func.func @transform_0(%arg0: i32) -> (i32, i32) {
    %c0_i32 = arith.constant 0 : i32
    %c0_i32_0 = arith.constant 0 : i32
    return %arg0, %c0_i32 : i32, i32
  }
  func.func @transform_1(%arg0: i32) -> (i32, i32) {
    %c0_i32 = arith.constant 0 : i32
    %c0_i32_0 = arith.constant 0 : i32
    %c0_i32_1 = arith.constant 0 : i32
    return %c0_i32, %c0_i32_0 : i32, i32
  }
  func.func @transform_2(%arg0: i32) -> (i32, i32) {
    %c0_i32 = arith.constant 0 : i32
    %c0_i32_0 = arith.constant 0 : i32
    return %arg0, %c0_i32 : i32, i32
  }
}

</mosaic_0001>

<bundles_post_ra>
// kernel: tpu_custom_call.1
= control target key start
LH: loop header
LB: loop body
LE: loop exit
PB: predicated region body
PF: predicated region fallthrough
CT: control target
= control target key end

     0   :  { %vm15_vm0 = vcmask 64512   ;;  %s181_s0 = inlined_call_operand.vmem [shape: f32[16,8], index: 0, kind: input, shape index: {}]   ;;  %s182_s1 = inlined_call_operand.vmem [shape: f32[8,64], index: 1, kind: input, shape index: {}]   ;;  %s183_s2 = inlined_call_operand.hbm [shape: f32[16,64], index: 2, kind: output, shape index: {}]  }
   0x1   :  { %v14_v0 = vld [vmem:[%s182_s1] sm:$0xff]  ;;  %v13_v2 = vld [vmem:[%s181_s0 + $0x8] sm:$0xff] }
   0x2   :  { %v12_v1 = vld [vmem:[%s181_s0] sm:$0xff]  ;;  %121 = vmatprep.subr.mxu0 %v14_v0 }
   0x3   :  { %123 = vmatprep.mubr.msk.f32.mxu0 %vm15_vm0, %v12_v1 }
   0x4   :  { %7 = vsyncpa [#allocation3], 0  ;;  %122 = vmatpush3.msra.mxu0 %v14_v0  ;;  %s151_s15 = smov [#allocation2]   ;;  %vm97_vm1 = vcmask 523264  }
   0x5   :  { %124 = vmatmul.mubr.msk.f32.vlgmr.msra.gmra.mxu0 %vm15_vm0, %v13_v2  ;;  %s105_s16 = sshll.u32 %s151_s15, 4  ;;  %s106_s16 = int_to_ptr.vmem [resolvable:$true] %s105_s16 }
   0x6   :  { %s129_s1 = scalar_lea.vmem %s106_s16, 256  ;;  %p134_p1 = scmp.lt.s32.totalorder %s106_s16, %s106_s16 }
   0x7   :  { %p130_p0 = scmp.ne.s32.totalorder %s106_s16, %s129_s1  ;;  %p135_p2 = scmp.lt.s32.totalorder %s129_s1, %s129_s1 }
   0x9   :  { %p136_p3 = por %p135_p2, %p134_p1 }
   0xb   :  { %p137_p4 = pnand %p136_p3, %p130_p0 }
  0xc5   :  { %v125_v3 = vpop.f32.mrf.mxu0 }
  0xc6   :  { %99 = vst.msk [vmem:[#allocation2 + $0x8] sm:$0xff] %vm97_vm1, %v125_v3 }
  0xc7   :  { %v88_v4 = vpop.f32.mrf.mxu0 }
  0xc8   :  { %98 = vst.msk [vmem:[#allocation2] sm:$0xff] %vm97_vm1, %v88_v4 }
  0xc9   :  { %140 = shalt.err (!%p137_p4)
}
  0xca   :  { %s152_s0 = smov 128   ;;  %s153_s17 = smov 8  }
  0xcb   :  { %111 = dma.vmem_to_hbm [thread:$0]  %s106_s16, 256, %s183_s2, [#allocation3], %s152_s0, %s152_s0, %s153_s17  }
  0xcc   :  { %149 = dma.done.wait [#allocation3], 256  }
  0xcd   :  { %150 = vsyncadd [#allocation3], 4294967040 }
  0xce   :  { %115 = vsyncpa [#allocation3], 1 }

</bundles_post_ra>
